<compile_context>
chip_gen: v7x
topology: tpu7x:2x2x1
jax: 0.10.0
libtpu: 0.0.40
codegen_flags: <defaults>
</compile_context>

<pallas_src>
import math
import functools

import jax
import jax.numpy as jnp
from jax.experimental import pallas as pl
from jax.experimental.pallas import tpu as pltpu


def data_embedding_kernel(x_ref, mark_ref, pe_ref, w_ref, tab_ref, out_ref,
                          *, day_offset, month_offset):
    # x_ref   : (tb, tl, 3C)  -- [x_{l-1} | x_l | x_{l+1}] stacked along channels
    # mark_ref: (tb, tl, 3) i32 -- [month, day, weekday]
    # pe_ref  : (tl, Dp)      -- sinusoidal positional rows for this L-tile
    # w_ref   : (3C, Dp)      -- conv taps stacked: [W0.T ; W1.T ; W2.T]
    # tab_ref : (52, Dp)      -- [weekday(7) ; day(32) ; month(13)] tables
    # out_ref : (tb, tl, Dp)
    tb, tl, _ = x_ref.shape
    n_tab = tab_ref.shape[0]

    # Hoisted out of the batch loop (JAX does not CSE broadcasts).
    pe = pe_ref[...].astype(jnp.float32)
    iota = jax.lax.broadcasted_iota(jnp.int32, (tl, n_tab), 1)

    # TODO(synk): if a bundle dump shows this kernel vex/VALU-bound rather than
    # DMA-bound, fuse the two matmuls into one (tl, 3C+52) @ (3C+52, Dp) push via a
    # VMEM scratch; with pe reuse in place the kernel is expected to stay DMA-bound.
    for b in range(tb):                                     # small static unroll
        # TokenEmbedding: circular conv1d(k=3) as one MXU matmul with K = 3*C.
        val = jnp.dot(x_ref[b], w_ref[...], preferred_element_type=jnp.float32)

        # TemporalEmbedding: one multi-hot matmul (sub-table row ranges are
        # disjoint, so OR-ing the three one-hots is exact).
        mark = mark_ref[b]
        hot = ((iota == mark[:, 2:3])                       # weekday -> rows [0, 7)
               | (iota == mark[:, 1:2] + day_offset)        # day     -> rows [7, 39)
               | (iota == mark[:, 0:1] + month_offset))     # month   -> rows [39, 52)
        temporal = jnp.dot(hot.astype(tab_ref.dtype), tab_ref[...],
                           preferred_element_type=jnp.float32)

        # PositionalEmbedding add; dropout is identity (eval mode).
        # TODO(synk): training-mode dropout (p=0.1) not implemented; matches eval().
        out_ref[b] = (val + temporal + pe).astype(out_ref.dtype)


def _choose_tiles(B, L, target_rows, max_tb):
    """Pick (tl, tb) so each grid step covers ~target_rows rows and, when the
    problem allows it, there are >= 2 grid steps (keeps both v7x TCs busy)."""
    if L >= target_rows:
        tl, tb = (target_rows // 8) * 8, 1
    else:
        tl = L
        tb = max(1, min(B, max_tb, target_rows // max(L, 1)))
    if pl.cdiv(L, tl) * pl.cdiv(B, tb) < 2:
        if tb >= 2:
            tb = pl.cdiv(tb, 2)
        elif L >= 16:
            tl = ((pl.cdiv(L, 2) + 7) // 8) * 8
    return tl, tb


def data_embedding(x, x_mark, w_conv, wk_tab, day_tab, mon_tab, *,
                   dtype=jnp.float32, target_rows=1024, max_tb=16):
    """x: (B, L, C) f32, x_mark: (B, L, 3) int, w_conv: (D, C, 3) f32.

    dtype: storage dtype for the MXU operands / pe / output. Keep f32 on v5e;
    jnp.bfloat16 roughly halves HBM traffic on v6e/v7x (accumulation stays f32,
    but the 1e-4 tolerance vs the f32 reference must then be relaxed).
    """
    B, L, C = x.shape
    D = w_conv.shape[0]
    Dp = pl.cdiv(D, 128) * 128            # lane-dense output width

    # --- wrapper-side glue (cheap relative to the (B, L, D) output) ------------
    # Shifted/stacked input for the fused circular conv: (B, L, 3C).
    x_st = jnp.concatenate(
        [jnp.roll(x, 1, axis=1), x, jnp.roll(x, -1, axis=1)], axis=-1).astype(dtype)

    # Conv taps stacked to (3C, Dp); temporal tables concatenated to (52, Dp).
    w_st = jnp.concatenate(
        [w_conv[:, :, 0].T, w_conv[:, :, 1].T, w_conv[:, :, 2].T], axis=0)
    tab = jnp.concatenate([wk_tab, day_tab, mon_tab], axis=0)
    if Dp != D:
        # TODO(synk): for d_model not a multiple of 128, prefer propagating the
        # padded (B, L, Dp) layout to the consumer instead of the post-slice below
        # (the slice re-reads/re-writes the whole output in HBM).
        w_st = jnp.pad(w_st, ((0, 0), (0, Dp - D)))
        tab = jnp.pad(tab, ((0, 0), (0, Dp - D)))
    w_st = w_st.astype(dtype)
    tab = tab.astype(dtype)

    # Sinusoidal positional table (first L rows), padded to Dp lanes.
    pos = jnp.arange(L, dtype=jnp.float32)[:, None]
    div = jnp.exp(jnp.arange(0, D, 2, dtype=jnp.float32) * (-math.log(10000.0) / D))
    ang = pos * div
    pe = jnp.zeros((L, Dp), jnp.float32)
    pe = pe.at[:, 0:D:2].set(jnp.sin(ang))
    pe = pe.at[:, 1:D:2].set(jnp.cos(ang[:, :D // 2]))
    pe = pe.astype(dtype)

    mark = x_mark.astype(jnp.int32)

    # --- tiling ----------------------------------------------------------------
    tl, tb = _choose_tiles(B, L, target_rows, max_tb)
    grid = (pl.cdiv(L, tl), pl.cdiv(B, tb))    # batch is the INNERMOST axis
    day_off = wk_tab.shape[0]
    mon_off = wk_tab.shape[0] + day_tab.shape[0]

    kernel = functools.partial(
        data_embedding_kernel, day_offset=day_off, month_offset=mon_off)

    out = pl.pallas_call(
        kernel,
        out_shape=jax.ShapeDtypeStruct((B, L, Dp), dtype),
        grid_spec=pltpu.PrefetchScalarGridSpec(
            num_scalar_prefetch=0,
            grid=grid,
            in_specs=[
                pl.BlockSpec((tb, tl, 3 * C), lambda i, b: (b, i, 0)),
                pl.BlockSpec((tb, tl, 3), lambda i, b: (b, i, 0)),
                # pe / weights / table block indices don't depend on the inner
                # (batch) axis -> their re-DMA is skipped across batch steps.
                pl.BlockSpec((tl, Dp), lambda i, b: (i, 0)),
                pl.BlockSpec((3 * C, Dp), lambda i, b: (0, 0)),
                pl.BlockSpec((tab.shape[0], Dp), lambda i, b: (0, 0)),
            ],
            out_specs=pl.BlockSpec((tb, tl, Dp), lambda i, b: (b, i, 0)),
        ),
        compiler_params=pltpu.CompilerParams(
            dimension_semantics=("parallel", "parallel")),
    )(x_st, mark, pe, w_st, tab)

    return out[:, :, :D] if Dp != D else out


def _reference(x, x_mark, w_conv, wk_tab, day_tab, mon_tab):
    B, L, C = x.shape
    D = w_conv.shape[0]
    val = (jnp.einsum('blc,cd->bld', jnp.roll(x, 1, axis=1), w_conv[:, :, 0].T)
           + jnp.einsum('blc,cd->bld', x, w_conv[:, :, 1].T)
           + jnp.einsum('blc,cd->bld', jnp.roll(x, -1, axis=1), w_conv[:, :, 2].T))
    pos = jnp.arange(L, dtype=jnp.float32)[:, None]
    div = jnp.exp(jnp.arange(0, D, 2, dtype=jnp.float32) * (-math.log(10000.0) / D))
    ang = pos * div
    pe = jnp.zeros((L, D), jnp.float32)
    pe = pe.at[:, 0::2].set(jnp.sin(ang))
    pe = pe.at[:, 1::2].set(jnp.cos(ang[:, :D // 2]))
    temporal = (wk_tab[x_mark[..., 2]] + day_tab[x_mark[..., 1]]
                + mon_tab[x_mark[..., 0]])
    return val + pe[None] + temporal


if __name__ == "__main__":
    B, L, C, D = 4, 16, 4, 128
    key = jax.random.PRNGKey(0)
    k_x, k_w, k_wk, k_day, k_mon, k_m1, k_m2, k_m3 = jax.random.split(key, 8)

    x = jax.random.normal(k_x, (B, L, C), dtype=jnp.float32)

    # x_mark columns: [month (0..12), day (0..31), weekday (0..6)]
    month = jax.random.randint(k_m1, (B, L, 1), 0, 13, dtype=jnp.int32)
    day = jax.random.randint(k_m2, (B, L, 1), 0, 32, dtype=jnp.int32)
    weekday = jax.random.randint(k_m3, (B, L, 1), 0, 7, dtype=jnp.int32)
    x_mark = jnp.concatenate([month, day, weekday], axis=-1)

    # Deterministic parameter init (synthetic; kaiming-like scale for the conv).
    fan_in = C * 3
    w_conv = jax.random.normal(k_w, (D, C, 3), dtype=jnp.float32) * math.sqrt(2.0 / fan_in)
    wk_tab = jax.random.normal(k_wk, (7, D), dtype=jnp.float32)
    day_tab = jax.random.normal(k_day, (32, D), dtype=jnp.float32)
    mon_tab = jax.random.normal(k_mon, (13, D), dtype=jnp.float32)

    out = data_embedding(x, x_mark, w_conv, wk_tab, day_tab, mon_tab)
    out = jax.block_until_ready(out)

    ref = _reference(x, x_mark, w_conv, wk_tab, day_tab, mon_tab)
    assert out.shape == (B, L, D)
    assert jnp.allclose(out, ref, atol=1e-4, rtol=1e-4), "mismatch vs reference"

    print("KERNEL_OK")
</pallas_src>

<mosaic_0001>
module attributes {stable_mosaic.version = 11 : i64} {
  func.func @data_embedding_kernel(%arg0: i32, %arg1: i32, %arg2: memref<2x16x12xf32, #tpu.memory_space<vmem>>, %arg3: memref<2x16x3xi32, #tpu.memory_space<vmem>>, %arg4: memref<16x128xf32, #tpu.memory_space<vmem>>, %arg5: memref<12x128xf32, #tpu.memory_space<vmem>>, %arg6: memref<52x128xf32, #tpu.memory_space<vmem>>, %arg7: memref<2x16x128xf32, #tpu.memory_space<vmem>>) attributes {dimension_semantics = [#tpu.dimension_semantics<parallel>, #tpu.dimension_semantics<parallel>], iteration_bounds = array<i64: 1, 2>, scalar_prefetch = 0 : i64, scratch_operands = 0 : i64, tpu.core_type = #tpu.core_type<tc>, window_params = [{transform_indices = @transform_0, window_bounds = array<i64: 2, 16, 12>}, {transform_indices = @transform_1, window_bounds = array<i64: 2, 16, 3>}, {transform_indices = @transform_2, window_bounds = array<i64: 16, 128>}, {pipeline_mode = #tpu.pipeline_mode<synchronous>, transform_indices = @transform_3, window_bounds = array<i64: 12, 128>}, {pipeline_mode = #tpu.pipeline_mode<synchronous>, transform_indices = @transform_4, window_bounds = array<i64: 52, 128>}, {transform_indices = @transform_5, window_bounds = array<i64: 2, 16, 128>}]} {
    %c0 = arith.constant 0 : index
    %c0_0 = arith.constant 0 : index
    %0 = vector.load %arg4[%c0, %c0_0] : memref<16x128xf32, #tpu.memory_space<vmem>>, vector<16x128xf32>
    %1 = tpu.iota {dimensions = array<i32: 1>} : vector<16x52xi32>
    %c0_1 = arith.constant 0 : index
    %c0_2 = arith.constant 0 : index
    %c0_3 = arith.constant 0 : index
    %2 = vector.load %arg2[%c0_1, %c0_2, %c0_3] : memref<2x16x12xf32, #tpu.memory_space<vmem>>, vector<1x16x12xf32>
    %3 = vector.shape_cast %2 : vector<1x16x12xf32> to vector<16x12xf32>
    %c0_4 = arith.constant 0 : index
    %c0_5 = arith.constant 0 : index
    %4 = vector.load %arg5[%c0_4, %c0_5] : memref<12x128xf32, #tpu.memory_space<vmem>>, vector<12x128xf32>
    %cst = arith.constant dense<0.000000e+00> : vector<16x128xf32>
    %5 = tpu.matmul %3, %4, %cst {dimension_numbers = #tpu.dot_dimension_numbers<[1], [0], [0], [1], [0, 0, 1, 1], [], []>} : vector<16x12xf32>, vector<12x128xf32>, vector<16x128xf32> -> vector<16x128xf32>
    %c0_6 = arith.constant 0 : index
    %c0_7 = arith.constant 0 : index
    %c0_8 = arith.constant 0 : index
    %6 = vector.load %arg3[%c0_6, %c0_7, %c0_8] : memref<2x16x3xi32, #tpu.memory_space<vmem>>, vector<1x16x3xi32>
    %7 = vector.shape_cast %6 : vector<1x16x3xi32> to vector<16x3xi32>
    %8 = vector.extract_strided_slice %7 {offsets = [0, 2], sizes = [16, 1], strides = [1, 1]} : vector<16x3xi32> to vector<16x1xi32>
    %9 = vector.broadcast %8 : vector<16x1xi32> to vector<16x52xi32>
    %10 = arith.cmpi eq, %1, %9 : vector<16x52xi32>
    %11 = vector.extract_strided_slice %7 {offsets = [0, 1], sizes = [16, 1], strides = [1, 1]} : vector<16x3xi32> to vector<16x1xi32>
    %c7_i32 = arith.constant 7 : i32
    %12 = vector.broadcast %c7_i32 : i32 to vector<16x1xi32>
    %13 = arith.addi %11, %12 : vector<16x1xi32>
    %14 = vector.broadcast %13 : vector<16x1xi32> to vector<16x52xi32>
    %15 = arith.cmpi eq, %1, %14 : vector<16x52xi32>
    %16 = arith.ori %10, %15 : vector<16x52xi1>
    %17 = vector.extract_strided_slice %7 {offsets = [0, 0], sizes = [16, 1], strides = [1, 1]} : vector<16x3xi32> to vector<16x1xi32>
    %c39_i32 = arith.constant 39 : i32
    %18 = vector.broadcast %c39_i32 : i32 to vector<16x1xi32>
    %19 = arith.addi %17, %18 : vector<16x1xi32>
    %20 = vector.broadcast %19 : vector<16x1xi32> to vector<16x52xi32>
    %21 = arith.cmpi eq, %1, %20 : vector<16x52xi32>
    %22 = arith.ori %16, %21 : vector<16x52xi1>
    %23 = arith.extui %22 : vector<16x52xi1> to vector<16x52xi32>
    %24 = arith.sitofp %23 : vector<16x52xi32> to vector<16x52xf32>
    %c0_9 = arith.constant 0 : index
    %c0_10 = arith.constant 0 : index
    %25 = vector.load %arg6[%c0_9, %c0_10] : memref<52x128xf32, #tpu.memory_space<vmem>>, vector<52x128xf32>
    %cst_11 = arith.constant dense<0.000000e+00> : vector<16x128xf32>
    %26 = tpu.matmul %24, %25, %cst_11 {dimension_numbers = #tpu.dot_dimension_numbers<[1], [0], [0], [1], [0, 0, 1, 1], [], []>} : vector<16x52xf32>, vector<52x128xf32>, vector<16x128xf32> -> vector<16x128xf32>
    %27 = arith.addf %5, %26 : vector<16x128xf32>
    %28 = arith.addf %27, %0 : vector<16x128xf32>
    %c0_12 = arith.constant 0 : index
    %c0_13 = arith.constant 0 : index
    %c0_14 = arith.constant 0 : index
    %29 = vector.load %arg7[%c0_12, %c0_13, %c0_14] : memref<2x16x128xf32, #tpu.memory_space<vmem>>, vector<1x16x128xf32>
    %30 = vector.shape_cast %29 : vector<1x16x128xf32> to vector<16x128xf32>
    %31 = vector.shape_cast %28 : vector<16x128xf32> to vector<1x16x128xf32>
    tpu.vector_store %arg7[%c0_12, %c0_13, %c0_14], %31 {strides = array<i32>} : memref<2x16x128xf32, #tpu.memory_space<vmem>>, vector<1x16x128xf32>,
    %c1 = arith.constant 1 : index
    %c0_15 = arith.constant 0 : index
    %c0_16 = arith.constant 0 : index
    %32 = vector.load %arg2[%c1, %c0_15, %c0_16] : memref<2x16x12xf32, #tpu.memory_space<vmem>>, vector<1x16x12xf32>
    %33 = vector.shape_cast %32 : vector<1x16x12xf32> to vector<16x12xf32>
    %c0_17 = arith.constant 0 : index
    %c0_18 = arith.constant 0 : index
    %34 = vector.load %arg5[%c0_17, %c0_18] : memref<12x128xf32, #tpu.memory_space<vmem>>, vector<12x128xf32>
    %cst_19 = arith.constant dense<0.000000e+00> : vector<16x128xf32>
    %35 = tpu.matmul %33, %34, %cst_19 {dimension_numbers = #tpu.dot_dimension_numbers<[1], [0], [0], [1], [0, 0, 1, 1], [], []>} : vector<16x12xf32>, vector<12x128xf32>, vector<16x128xf32> -> vector<16x128xf32>
    %c1_20 = arith.constant 1 : index
    %c0_21 = arith.constant 0 : index
    %c0_22 = arith.constant 0 : index
    %36 = vector.load %arg3[%c1_20, %c0_21, %c0_22] : memref<2x16x3xi32, #tpu.memory_space<vmem>>, vector<1x16x3xi32>
    %37 = vector.shape_cast %36 : vector<1x16x3xi32> to vector<16x3xi32>
    %38 = vector.extract_strided_slice %37 {offsets = [0, 2], sizes = [16, 1], strides = [1, 1]} : vector<16x3xi32> to vector<16x1xi32>
    %39 = vector.broadcast %38 : vector<16x1xi32> to vector<16x52xi32>
    %40 = arith.cmpi eq, %1, %39 : vector<16x52xi32>
    %41 = vector.extract_strided_slice %37 {offsets = [0, 1], sizes = [16, 1], strides = [1, 1]} : vector<16x3xi32> to vector<16x1xi32>
    %c7_i32_23 = arith.constant 7 : i32
    %42 = vector.broadcast %c7_i32_23 : i32 to vector<16x1xi32>
    %43 = arith.addi %41, %42 : vector<16x1xi32>
    %44 = vector.broadcast %43 : vector<16x1xi32> to vector<16x52xi32>
    %45 = arith.cmpi eq, %1, %44 : vector<16x52xi32>
    %46 = arith.ori %40, %45 : vector<16x52xi1>
    %47 = vector.extract_strided_slice %37 {offsets = [0, 0], sizes = [16, 1], strides = [1, 1]} : vector<16x3xi32> to vector<16x1xi32>
    %c39_i32_24 = arith.constant 39 : i32
    %48 = vector.broadcast %c39_i32_24 : i32 to vector<16x1xi32>
    %49 = arith.addi %47, %48 : vector<16x1xi32>
    %50 = vector.broadcast %49 : vector<16x1xi32> to vector<16x52xi32>
    %51 = arith.cmpi eq, %1, %50 : vector<16x52xi32>
    %52 = arith.ori %46, %51 : vector<16x52xi1>
    %53 = arith.extui %52 : vector<16x52xi1> to vector<16x52xi32>
    %54 = arith.sitofp %53 : vector<16x52xi32> to vector<16x52xf32>
    %c0_25 = arith.constant 0 : index
    %c0_26 = arith.constant 0 : index
    %55 = vector.load %arg6[%c0_25, %c0_26] : memref<52x128xf32, #tpu.memory_space<vmem>>, vector<52x128xf32>
    %cst_27 = arith.constant dense<0.000000e+00> : vector<16x128xf32>
    %56 = tpu.matmul %54, %55, %cst_27 {dimension_numbers = #tpu.dot_dimension_numbers<[1], [0], [0], [1], [0, 0, 1, 1], [], []>} : vector<16x52xf32>, vector<52x128xf32>, vector<16x128xf32> -> vector<16x128xf32>
    %57 = arith.addf %35, %56 : vector<16x128xf32>
    %58 = arith.addf %57, %0 : vector<16x128xf32>
    %c1_28 = arith.constant 1 : index
    %c0_29 = arith.constant 0 : index
    %c0_30 = arith.constant 0 : index
    %59 = vector.load %arg7[%c1_28, %c0_29, %c0_30] : memref<2x16x128xf32, #tpu.memory_space<vmem>>, vector<1x16x128xf32>
    %60 = vector.shape_cast %59 : vector<1x16x128xf32> to vector<16x128xf32>
    %61 = vector.shape_cast %58 : vector<16x128xf32> to vector<1x16x128xf32>
    tpu.vector_store %arg7[%c1_28, %c0_29, %c0_30], %61 {strides = array<i32>} : memref<2x16x128xf32, #tpu.memory_space<vmem>>, vector<1x16x128xf32>,
    return
  }
  func.func @transform_0(%arg0: i32, %arg1: i32) -> (i32, i32, i32) {
    %c0_i32 = arith.constant 0 : i32
    %c0_i32_0 = arith.constant 0 : i32
    return %arg1, %arg0, %c0_i32 : i32, i32, i32
  }
  func.func @transform_1(%arg0: i32, %arg1: i32) -> (i32, i32, i32) {
    %c0_i32 = arith.constant 0 : i32
    %c0_i32_0 = arith.constant 0 : i32
    return %arg1, %arg0, %c0_i32 : i32, i32, i32
  }
  func.func @transform_2(%arg0: i32, %arg1: i32) -> (i32, i32) {
    %c0_i32 = arith.constant 0 : i32
    %c0_i32_0 = arith.constant 0 : i32
    return %arg0, %c0_i32 : i32, i32
  }
  func.func @transform_3(%arg0: i32, %arg1: i32) -> (i32, i32) {
    %c0_i32 = arith.constant 0 : i32
    %c0_i32_0 = arith.constant 0 : i32
    %c0_i32_1 = arith.constant 0 : i32
    return %c0_i32, %c0_i32_0 : i32, i32
  }
  func.func @transform_4(%arg0: i32, %arg1: i32) -> (i32, i32) {
    %c0_i32 = arith.constant 0 : i32
    %c0_i32_0 = arith.constant 0 : i32
    %c0_i32_1 = arith.constant 0 : i32
    return %c0_i32, %c0_i32_0 : i32, i32
  }
  func.func @transform_5(%arg0: i32, %arg1: i32) -> (i32, i32, i32) {
    %c0_i32 = arith.constant 0 : i32
    %c0_i32_0 = arith.constant 0 : i32
    return %arg1, %arg0, %c0_i32 : i32, i32, i32
  }
}

</mosaic_0001>

<bundles_post_ra>
// kernel: tpu_custom_call.1
= control target key start
LH: loop header
LB: loop body
LE: loop exit
PB: predicated region body
PF: predicated region fallthrough
CT: control target
= control target key end

     0   :  { %10 = vsyncpa [#allocation3], 0  ;;  %s1445_s0 = inlined_call_operand.vmem [shape: f32[4,16,12], index: 0, kind: input, shape index: {}]   ;;  %s1446_s1 = inlined_call_operand.vmem [shape: s32[4,16,3], index: 1, kind: input, shape index: {}]   ;;  %s1447_s2 = inlined_call_operand.vmem [shape: f32[16,128], index: 2, kind: input, shape index: {}]   ;;  %s1448_s3 = inlined_call_operand.vmem [shape: f32[12,128], index: 3, kind: input, shape index: {}]   ;;  %s1449_s4 = inlined_call_operand.vmem [shape: f32[52,128], index: 4, kind: input, shape index: {}]   ;;  %s1450_s5 = inlined_call_operand.hbm [shape: f32[4,16,128], index: 5, kind: output, shape index: {}]  }
   0x1   :  { %12 = vsyncpa [#allocation3 + $0x1], 0  ;;  %s1251_s18 = smov 0   ;;  %s1253_s19 = smov 0  }
   0x2   :  { %s1255_s20 = smov 0   ;;  %s1257_s21 = smov 0  }
   0x3   :  { %s1259_s22 = smov 0   ;;  %s1261_s23 = smov 0  }
   0x4 LB: > { %s904_s24 = sadd.s32 4294967295, %s1211_s23   ;;  %s905_s25 = sadd.s32 4294967294, %s1211_s23   ;;  %s1211_s23 = sphi %s1261_s23, %s18_s23   ;;  %s1207_s22 = sphi %s1259_s22, %s1459_s22   ;;  %s1203_s21 = sphi %s1257_s21, %s1458_s21   ;;  %s1199_s20 = sphi %s1255_s20, %s1457_s20   ;;  %s1195_s19 = sphi %s1253_s19, %s1456_s19   ;;  %s1191_s18 = sphi %s1251_s18, %s1455_s18  }
   0x5   : > { %s27_s26 = sadd.s32 1, %s1207_s22  ;;  %s163_s27 = sadd.s32 1, %s1199_s20 }
   0x6   : > { %p28_p0 = scmp.ge.s32.totalorder %s27_s26, 2  ;;  %p173_p1 = scmp.ne.s32.totalorder %s1199_s20, %s1195_s19 }
   0x7   : > { %p174_p2 = scmp.eq.s32.totalorder %s904_s24, 1  ;;  %p179_p3 = scmp.ne.s32.totalorder %s1195_s19, %s1191_s18 }
   0x8   : > { %s1461_s26 = smov (%p28_p0, %s27_s26), 0  ;;  %p180_p5 = scmp.eq.s32.totalorder %s905_s25, 1 }
   0x9   : > { %p1291_p4 = por %p174_p2, %p173_p1  ;;  %s158_s29 = ssub.s32 %s1207_s22, %s1461_s26 }
   0xa   : > { %p909_p6 = scmp.ge.s32.totalorder %s1211_s23, 1  ;;  %p161_p7 = scmp.eq.s32.totalorder %s158_s29, 0 }
   0xb   : > { %p1298_p8 = por %p180_p5, %p179_p3  ;;  %p243_p9 = scmp.lt.s32.totalorder %s1211_s23, 3 }
   0xc   : > { %s1304_s6 = scalar_select %p161_p7, %s1199_s20, %s163_s27  }
   0xd   : > { %p244_p10 = pnand %p909_p6, %p243_p9 }
   0xe   : > { %s911_s7 = sshll.u32 (!%p244_p10), %s1203_s21, 1  ;;  %v1213_v0 = vmov (!%p244_p10), 2   ;;  %v1214_v1 = vmov (!%p244_p10), 1   ;;  %v369_v8 = vld [vmem:[%s1449_s4] sm:$0xff] (!%p244_p10)  ;;  %v370_v9 = vld [vmem:[%s1449_s4 + $0x8] sm:$0xff] (!%p244_p10)  ;;  %v371_v12 = vld [vmem:[%s1449_s4 + $0x10] sm:$0xff] (!%p244_p10)  ;;  %v325_v35 = vlaneseq (!%p244_p10) }
   0xf   : > { %247 = sbr.rel (%p244_p10) target bundleno = 423 (0x1a7), region = 40  ;;  %1125 = vset.pattern.permute.xlu1 (!%p244_p10), %v1213_v0  ;;  %p293_p11 = scmp.lt.s32.totalorder (!%p244_p10), %s911_s7, 3  ;;  %1126 = vset.pattern.permute.xlu0 (!%p244_p10), %v1214_v1  ;;  %v1023_v10 = vpack.c.bf16 (!%p244_p10), %v370_v9, %v369_v8  ;;  %v372_v13 = vld [vmem:[%s1449_s4 + $0x18] sm:$0xff] (!%p244_p10)  ;;  %v1215_v16 = vmov (!%p244_p10), 0   ;;  %v373_v17 = vld [vmem:[%s1449_s4 + $0x20] sm:$0xff] (!%p244_p10)  ;;  %v374_v18 = vld [vmem:[%s1449_s4 + $0x28] sm:$0xff] (!%p244_p10) }
  0x10   : > { %v1027_v14 = vpack.c.bf16 (!%p244_p10), %v372_v13, %v371_v12  ;;  %v1031_v20 = vpack.c.bf16 (!%p244_p10), %v374_v18, %v373_v17  ;;  %v375_v23 = vld [vmem:[%s1449_s4 + $0x30] sm:$0xf] (!%p244_p10)  ;;  %vm383_vm0 = vcmask (!%p244_p10), 1043456   ;;  %v329_v25 = vld [vmem:[%s1448_s3] sm:$0xff] (!%p244_p10)  ;;  %v330_v26 = vld [vmem:[%s1448_s3 + $0x8] sm:$0xf] (!%p244_p10) }
  0x11   : > { %1024 = vmatprep.subr.bf16.mxu0 (!%p244_p10), %v1023_v10  ;;  %1042 = vmatprep.subr.bf16.mxu1 (!%p244_p10), %v1023_v10  ;;  %v1035_v27 = vpack.c.bf16 (!%p244_p10), %v330_v26, %v329_v25  ;;  %vm1216_vm1 = vmmov (!%p244_p10), 1   ;;  %v601_v29 = vld [vmem:[%s1449_s4 + $0x30] sm:$0xf] (!%p244_p10)  ;;  %v555_v30 = vld [vmem:[%s1448_s3 + $0x8] sm:$0xf] (!%p244_p10)  ;;  %v326_v38 = vand.u32 (!%p244_p10), 127, %v325_v35 }
  0x12   : > { %1026 = vmatpush3.bf16.msra.mxu0 (!%p244_p10), %v1023_v10  ;;  %1044 = vmatpush3.bf16.msra.mxu1 (!%p244_p10), %v1023_v10  ;;  %vm1345_vm2 = vmpackc.low (!%p244_p10), %vm383_vm0, %vm1216_vm1  ;;  %v1053_v31 = vpack.c.bf16 (!%p244_p10), %v555_v30, %v329_v25  ;;  %vm376_vm7 = vcmask (!%p244_p10), 424960   ;;  %v1217_v42 = vmov (!%p244_p10), 0.0   ;;  %vm462_vm15 = vcmask (!%p244_p10), 97280   ;;  %v324_v55 = vld [vmem:[%s1447_s2 + $0x8] sm:$0xff] (!%p244_p10)  ;;  %v323_v56 = vld [vmem:[%s1447_s2] sm:$0xff] (!%p244_p10)  ;;  %s948_s17 = sshll.u32 (!%p244_p10), %s1203_s21, 9 }
  0x13   : > { %1028 = vmatprep.subr.bf16.mxu0 (!%p244_p10), %v1027_v14  ;;  %1046 = vmatprep.subr.bf16.mxu1 (!%p244_p10), %v1027_v14  ;;  %s1397_s27 = scalar_lea.hbm (!%p244_p10), %s1450_s5, %s948_s17  ;;  %s1218_s21 = smov (!%p244_p10), [#allocation2]  }
  0x16   : > { %s1463_s7 = smov (!%p293_p11, %s911_s7), 3  ;;  %1030 = vmatpush3.bf16.msra.mxu0 %v1027_v14  ;;  %1048 = vmatpush3.bf16.msra.mxu1 %v1027_v14 }
  0x17   : > { %s945_s8 = sshll.u32 %s1463_s7, 4  ;;  %1032 = vmatprep.subr.bf16.mxu0 %v1031_v20  ;;  %1050 = vmatprep.subr.bf16.mxu1 %v1031_v20  ;;  %s288_s7 = sand.u32 1, %s1195_s19  }
  0x18   : > { %s312_s11 = scalar_lea.vmem %s1446_s1, %s945_s8  ;;  %s1367_s10 = scalar_lea.vmem %s1445_s0, %s945_s8 }
  0x19   : > { %v927_v2 = vld [vmem:[%s312_s11 + $0x10] sm:$0xff]  ;;  %v331_v3 = vld [vmem:[%s312_s11] sm:$0xff]  ;;  %v332_v4 = vld [vmem:[%s312_s11 + $0x8] sm:$0xff]  ;;  %s910_s8 = sshll.u32 %s288_s7, 5  ;;  %s1399_s29 = scalar_lea.sflag [#allocation3], %s288_s7 }
  0x1a   : > { %560 = vperm.xlu1 %1125, %v927_v2   ;;  %v341_v5 = vadd.s32 7, %v331_v3  ;;  %v342_v6 = vadd.s32 7, %v332_v4  ;;  %v567_v7 = vadd.s32 7, %v927_v2  ;;  %v353_v11 = vadd.s32 39, %v331_v3  ;;  %v928_v15 = vld [vmem:[%s312_s11 + $0x18] sm:$0xff]  ;;  %1034 = vmatpush3.bf16.msra.mxu0 %v1031_v20  ;;  %v327_v46 = vld [vmem:[%s1367_s10] sm:$0xff] }
  0x1b   : > { %v568_v19 = vadd.s32 7, %v928_v15  ;;  %v354_v21 = vadd.s32 39, %v332_v4  ;;  %v579_v22 = vadd.s32 39, %v927_v2  ;;  %1052 = vmatpush3.bf16.msra.mxu1 %v1031_v20  ;;  %987 = vmatprep.subr.msk.mxu0 %vm383_vm0, %v375_v23  ;;  %v580_v24 = vadd.s32 39, %v928_v15  ;;  %v328_v51 = vld [vmem:[%s1367_s10 + $0x8] sm:$0xff]  ;;  %v925_v52 = vld [vmem:[%s1367_s10 + $0x10] sm:$0xff] }
  0x1c   : > { %344 = vperm.xlu0 %1126, %v341_v5   ;;  %1011 = vmatprep.subr.msk.mxu1 %vm383_vm0, %v601_v29  ;;  %v926_v54 = vld [vmem:[%s1367_s10 + $0x18] sm:$0xff]  ;;  %s290_s15 = scalar_lea.vmem [#allocation2], %s910_s8  ;;  %s1137_s10 = sshll.u32 %s1218_s21, 4  ;;  %s1138_s10 = int_to_ptr.vmem [resolvable:$false] %s1137_s10 }
  0x1d   : > { %s792_s16 = sshll.u32 %s290_s15, 4  ;;  %s1139_s8 = scalar_lea.vmem %s1138_s10, 1024  ;;  %s1392_s16 = int_to_ptr.vmem [resolvable:$true] %s792_s16 }
  0x1e   : > { %337 = vperm.xlu1 %1125, %v332_v4   ;;  %988 = vmatpush3.msk.msra.mxu0 %vm383_vm0, %v375_v23  ;;  %s1133_s9 = scalar_lea.vmem %s1392_s16, 512  ;;  %p1140_p1 = scmp.lt.s32.totalorder %s1392_s16, %s1138_s10 }
  0x1f   : > { %1037 = vmatprep.subr.msk.bf16.mxu0 %vm1345_vm2, %v1035_v27  ;;  %1012 = vmatpush3.msk.msra.mxu1 %vm383_vm0, %v601_v29  ;;  %p1134_p12 = scmp.ne.s32.totalorder %s1392_s16, %s1133_s9  ;;  %p1141_p2 = scmp.lt.s32.totalorder %s1139_s8, %s1133_s9 }
  0x20   : > { %347 = vperm.xlu0 %1126, %v342_v6   ;;  %1055 = vmatprep.subr.msk.bf16.mxu1 %vm1345_vm2, %v1053_v31 }
  0x21   : > { %p1135_p13 = pnand %p1134_p12, %p1291_p4  ;;  %p1142_p3 = por %p1141_p2, %p1140_p1 }
  0x22   : > { %1127 = vset.pattern.permute.xlu1 %v1214_v1 }
  0x23   : > { %570 = vperm.xlu1 %1127, %v567_v7   ;;  %p1136_p0 = pneg %p1135_p13 }
  0x24   : > { %1128 = vset.pattern.permute.xlu0 %v1213_v0 }
  0x25   : > { %334 = vperm.xlu0 %1128, %v331_v3   ;;  %p1143_p5 = pnand %p1142_p3, %p1136_p0 }
  0x27   : > { %1129 = vset.pattern.permute.xlu1 %v1215_v16 }
  0x28   : > { %356 = vperm.xlu1 %1129, %v353_v11  }
  0x29   : > { %563 = vperm.xlu0 %1128, %v928_v15  }
  0x2c   : > { %1130 = vset.pattern.permute.xlu1 %v1214_v1 }
  0x2d   : > { %573 = vperm.xlu1 %1130, %v568_v19   ;;  %1132 = vset.pattern.permute.xlu0 %v1215_v16 }
  0x2e   : > { %359 = vperm.xlu0 %1132, %v354_v21  }
  0x31   : > { %1131 = vset.pattern.permute.xlu1 %v1215_v16 }
  0x32   : > { %582 = vperm.xlu1 %1131, %v579_v22  }
  0x36   : > { %585 = vperm.xlu1 %1131, %v580_v24  }
  0x99   : > { %v561_v32 = vpop.permute.xlu1 %560 }
  0x9a   : > { %vm565_vm0 = vcmp.eq.s32.totalorder %v326_v38, %v561_v32 }
  0x9b   : > { %v345_v33 = vpop.permute.xlu0 %344 }
  0x9c   : > { %vm349_vm3 = vcmp.eq.s32.totalorder %v326_v38, %v345_v33 }
  0x9d   : > { %v338_v34 = vpop.permute.xlu1 %337 }
  0x9e   : > { %vm340_vm10 = vcmp.eq.s32.totalorder %v326_v38, %v338_v34 }
  0x9f   : > { %v348_v36 = vpop.permute.xlu0 %347 }
  0xa0   : > { %vm350_vm9 = vcmp.eq.s32.totalorder %v326_v38, %v348_v36 }
  0xa1   : > { %vm352_vm11 = vmor %vm340_vm10, %vm350_vm9 }
  0xa2   : > { %v571_v37 = vpop.permute.xlu1 %570 }
  0xa3   : > { %vm575_vm13 = vcmp.eq.s32.totalorder %v326_v38, %v571_v37 }
  0xa4   : > { %v335_v39 = vpop.permute.xlu0 %334  ;;  %vm577_vm1 = vmor %vm565_vm0, %vm575_vm13 }
  0xa5   : > { %vm339_vm4 = vcmp.eq.s32.totalorder %v326_v38, %v335_v39 }
  0xa6   : > { %vm351_vm5 = vmor %vm339_vm4, %vm349_vm3 }
  0xa7   : > { %v357_v40 = vpop.permute.xlu1 %356 }
  0xa8   : > { %vm361_vm6 = vcmp.eq.s32.totalorder %v326_v38, %v357_v40  ;;  %v564_v41 = vpop.permute.xlu0 %563 }
  0xa9   : > { %vm363_vm8 = vmor %vm351_vm5, %vm361_vm6  ;;  %vm566_vm4 = vcmp.eq.s32.totalorder %v326_v38, %v564_v41 }
  0xaa   : > { %v917_v43 = vsel %vm363_vm8, 1.0, %v1217_v42 }
  0xab   : > { %989 = vmatprep.mubr.msk.f32.mxu0 %vm376_vm7, %v917_v43 }
  0xac   : > { %v574_v44 = vpop.permute.xlu1 %573 }
  0xad   : > { %v360_v45 = vpop.permute.xlu0 %359  ;;  %vm576_vm5 = vcmp.eq.s32.totalorder %v326_v38, %v574_v44 }
  0xae   : > { %vm362_vm12 = vcmp.eq.s32.totalorder %v326_v38, %v360_v45  ;;  %vm578_vm8 = vmor %vm566_vm4, %vm576_vm5 }
  0xaf   : > { %vm364_vm14 = vmor %vm352_vm11, %vm362_vm12 }
  0xb0   : > { %v918_v47 = vsel %vm364_vm14, 1.0, %v1217_v42 }
  0xb1   : > { %v583_v48 = vpop.permute.xlu1 %582  ;;  %990 = vmatmul.mubr.msk.f32.vlgmr.msra.gmra.mrb[0].mxu0 %vm376_vm7, %v918_v47 }
  0xb2   : > { %vm587_vm3 = vcmp.eq.s32.totalorder %v326_v38, %v583_v48  ;;  %1040 = vmatpush3.bf16.msk.msra.mxu0 %vm1345_vm2, %v1035_v27  ;;  %996 = vmatprep.mubr.msk.f32.mxu0 %vm462_vm15, %v327_v46 }
  0xb3   : > { %vm589_vm6 = vmor %vm577_vm1, %vm587_vm3 }
  0xb4   : > { %v929_v49 = vsel %vm589_vm6, 1.0, %v1217_v42 }
  0xb5   : > { %1013 = vmatprep.mubr.msk.f32.mxu1 %vm376_vm7, %v929_v49  ;;  %v586_v50 = vpop.permute.xlu1 %585 }
  0xb6   : > { %vm588_vm9 = vcmp.eq.s32.totalorder %v326_v38, %v586_v50 }
  0xb7   : > { %vm590_vm10 = vmor %vm578_vm8, %vm588_vm9 }
  0xb8   : > { %v930_v53 = vsel %vm590_vm10, 1.0, %v1217_v42 }
  0xb9   : > { %997 = vmatmul.mubr.msk.f32.vlgmr.msra.gmra.mrb[0].mxu0 %vm462_vm15, %v328_v51  ;;  %1014 = vmatmul.mubr.msk.f32.vlgmr.msra.gmra.mrb[0].mxu1 %vm376_vm7, %v930_v53 }
  0xba   : > { %1058 = vmatpush3.bf16.msk.msra.mxu1 %vm1345_vm2, %v1053_v31  ;;  %1020 = vmatprep.mubr.msk.f32.mxu1 %vm462_vm15, %v925_v52 }
  0xc1   : > { %1021 = vmatmul.mubr.msk.f32.vlgmr.msra.gmra.mrb[0].mxu1 %vm462_vm15, %v926_v54 }
 0x18c   : > { %v998_v57 = vpop.f32.mrb[0].mxu0 }
 0x18d   : > { %v548_v58 = vadd.f32 %v998_v57, %v324_v55  ;;  %v538_v59 = vpop.f32.mrb[1].mxu0 }
 0x18e   : > { %v547_v60 = vadd.f32 %v538_v59, %v323_v56 }
 0x18f   : > { %550 = vst [vmem:[%s290_s15 + $0x8] sm:$0xff] %v548_v58 }
 0x190   : > { %549 = vst [vmem:[%s290_s15] sm:$0xff] %v547_v60 }
 0x194   : > { %v1022_v61 = vpop.f32.mrb[0].mxu1 }
 0x195   : > { %v771_v62 = vadd.f32 %v1022_v61, %v324_v55  ;;  %v761_v63 = vpop.f32.mrb[1].mxu1 }
 0x196   : > { %v770_v0 = vadd.f32 %v761_v63, %v323_v56 }
 0x197   : > { %938 = vst [vmem:[%s290_s15 + $0x18] sm:$0xff] %v771_v62 }
 0x198   : > { %937 = vst [vmem:[%s290_s15 + $0x10] sm:$0xff] %v770_v0 }
 0x199   : > { %1146 = shalt.err (!%p1143_p5)
}
 0x19a   : > { %s1147_s7 = scalar_lea.hbm %s1397_s27, 512  ;;  %s1151_s13 = scalar_lea.hbm %s1450_s5, 1024 }
 0x19b   : > { %p1148_p6 = scmp.ne.s32.totalorder %s1397_s27, %s1147_s7  ;;  %p1152_p10 = scmp.lt.u32.totalorder %s1397_s27, %s1450_s5 }
 0x19c   : > { %p1153_p11 = scmp.lt.u32.totalorder %s1151_s13, %s1147_s7  ;;  %p1155_p13 = scmp.lt.u32.totalorder %s1147_s7, %s1397_s27 }
 0x19d   : > { %p1149_p7 = pnand %p1148_p6, %p1291_p4 }
 0x19e   : > { %p1154_p12 = por %p1153_p11, %p1152_p10 }
 0x19f   : > { %p1150_p9 = pneg %p1149_p7 }
 0x1a0   : > { %p1156_p0 = por %p1155_p13, %p1154_p12 }
 0x1a2   : > { %p1157_p1 = pnand %p1156_p0, %p1150_p9 }
 0x1a4   : > { %1160 = shalt.err (!%p1157_p1)
}
 0x1a5   : > { %s1219_s17 = smov 128   ;;  %s1220_s24 = smov 8  }
 0x1a6   : > { %1063 = dma.vmem_to_hbm [thread:$0]  (%p1291_p4), %s1392_s16, 512, %s1397_s27, %s1399_s29, %s1219_s17, %s1219_s17, %s1220_s24  }
 0x1a7 PF: > { %p1069_p2 = scmp.ge.s32.totalorder %s1211_s23, 2  ;;  %s807_s25 = sand.u32 1, %s1191_s18  }
 0x1a8   : > { %s808_s9 = scalar_lea.sflag [#allocation3], %s807_s25 }
 0x1a9   : > { %p1066_p3 = pnand %p1069_p2, %p1298_p8 }
 0x1ab   : > { %1186 = dma.done.wait (!%p1066_p3), %s808_s9, 512  }
 0x1ac   : > { %1188 = vsyncadd (!%p1066_p3), %s808_s9, 4294966784  ;;  %s18_s23 = sadd.s32 1, %s1211_s23   ;;  %s1455_s18 = smov %s1195_s19 }
 0x1ad   : > { %p15_p5 = scmp.ge.s32.totalorder %s18_s23, 4   ;;  %s1456_s19 = smov %s1199_s20 }
 0x1ae   : > { %s1457_s20 = smov %s1304_s6  ;;  %s1458_s21 = smov %s1207_s22 }
 0x1af   : > { %s1459_s22 = smov %s1461_s26  ;;  %17 = sbr.rel (!%p15_p5) target bundleno = 4 (0x4), region = 84 }
 0x1b6   :  { %813 = vsyncpa [#allocation3], 1 }
 0x1b7   :  { %815 = vsyncpa [#allocation3 + $0x1], 1 }

</bundles_post_ra>
